<compile_context>
chip_gen: v7x
topology: tpu7x:2x2x1
jax: 0.10.0
libtpu: 0.0.40
codegen_flags: <defaults>
</compile_context>

<pallas_src>
import jax
import jax.numpy as jnp
from jax.experimental import pallas as pl
from jax.experimental.pallas import tpu as pltpu

_LANES = 128
_SUBLANES = 8
_INT8_SUBLANES = 32      # native sublane tiling for the int8 mask stream
_MAX_BLOCK_ROWS = 4096   # 4096*128*(4+1) B = 2.5 MiB/step -> ~5 MiB double-buffered


def _round_up(x, m):
    return ((x + m - 1) // m) * m


def _uncertainty_loss_kernel(u_ref, m_ref, o_ref):
    """One grid step: accumulate per-sample losses of a [block_rows,128] tile
    into this core's resident [1,8,128] partial-sum output block."""
    i = pl.program_id(1)                                 # reduction axis

    u = u_ref[...].astype(jnp.float32)                   # [br,128] f32
    correct = m_ref[...] != 0                            # [br,128] bool
    per = jnp.where(correct, 1.0 - u, u)                 # [br,128] f32

    # Fold to a single native vreg tile with pure VALU adds (reshape keeps the
    # native (8,128) tiling, so it is a re-indexing, not a copy).
    folded = jnp.sum(per.reshape(-1, _SUBLANES, _LANES), axis=0)   # [8,128]

    @pl.when(i == 0)
    def _():
        o_ref[...] = jnp.zeros_like(o_ref)

    o_ref[...] += folded[None, :, :]


def uncertainty_loss(total_uncertainty, predictions, targets,
                     max_block_rows=_MAX_BLOCK_ROWS):
    """JAX/Pallas equivalent of UncertaintyLoss.forward (mean over batch)."""
    batch = total_uncertainty.shape[0]
    if batch == 0:
        # Matches torch.mean over an empty tensor (NaN).
        return jnp.float32(jnp.nan)

    # Fold the comparison into the prep pass; ship a 1-byte "correct" stream.
    # NaN predictions/targets never compare equal (same as the torch reference).
    match = (predictions == targets).astype(jnp.int8)
    u = total_uncertainty

    # Lane-dense [rows, 128] slab; rows aligned to 32 so both the f32 and the
    # int8 stream sit on their native sublane tiling.
    max_block_rows = max(_INT8_SUBLANES, _round_up(max_block_rows, _INT8_SUBLANES))
    rows = _round_up(pl.cdiv(batch, _LANES), _INT8_SUBLANES)
    num_par = 2 if rows >= 2 * _INT8_SUBLANES else 1      # v7x: feed both TCs
    per_core_rows = _round_up(pl.cdiv(rows, num_par), _INT8_SUBLANES)
    block_rows = min(max_block_rows, per_core_rows)
    tiles_per_core = pl.cdiv(per_core_rows, block_rows)
    rows = num_par * tiles_per_core * block_rows
    padded = rows * _LANES

    # Padding contributes exactly 0 to the sum (match==0 -> "incorrect", u==0
    # -> per-sample loss 0), so no in-kernel tail masking is needed.  Aligned
    # batches skip the pad entirely (pure zero-copy reshape).
    if padded != batch:
        u = jnp.pad(u, (0, padded - batch))
        match = jnp.pad(match, (0, padded - batch))
    u2 = u.reshape(rows, _LANES)
    m2 = match.reshape(rows, _LANES)

    in_map = lambda c, i: (c * tiles_per_core + i, 0)
    out_bytes = num_par * _SUBLANES * _LANES * 4
    cost = pl.CostEstimate(
        flops=4 * padded,
        transcendentals=0,
        bytes_accessed=padded * (u2.dtype.itemsize + 1) + out_bytes,
    )

    partials = pl.pallas_call(
        _uncertainty_loss_kernel,
        out_shape=jax.ShapeDtypeStruct((num_par, _SUBLANES, _LANES), jnp.float32),
        grid_spec=pltpu.PrefetchScalarGridSpec(
            num_scalar_prefetch=0,
            grid=(num_par, tiles_per_core),
            in_specs=[
                pl.BlockSpec((block_rows, _LANES), in_map),
                pl.BlockSpec((block_rows, _LANES), in_map),
            ],
            out_specs=pl.BlockSpec((1, _SUBLANES, _LANES), lambda c, i: (c, 0, 0)),
        ),
        compiler_params=pltpu.CompilerParams(
            dimension_semantics=("parallel", "arbitrary"),
        ),
        cost_estimate=cost,
    )(u2, m2)

    # Tiny finalize in XLA: sum the per-core [8,128] partials, divide by N.
    return jnp.sum(partials) / jnp.float32(batch)


def _reference(total_uncertainty, predictions, targets):
    correct = (predictions == targets).astype(jnp.float32)
    incorrect = 1.0 - correct
    u = total_uncertainty.astype(jnp.float32)
    per = incorrect * u + correct * (1.0 - u)
    return jnp.mean(per)


if __name__ == "__main__":
    # Small demo shape consistent with the module (1-D batch of per-sample values).
    k_u, k_p, k_t = jax.random.split(jax.random.PRNGKey(0), 3)
    batch = 8
    total_uncertainty = jax.random.uniform(k_u, (batch,), dtype=jnp.float32)
    predictions = jax.random.randint(k_p, (batch,), 0, 4, dtype=jnp.int32)
    targets = jax.random.randint(k_t, (batch,), 0, 4, dtype=jnp.int32)

    loss = jax.block_until_ready(uncertainty_loss(total_uncertainty, predictions, targets))
    ref = _reference(total_uncertainty, predictions, targets)
    assert jnp.allclose(loss, ref, atol=1e-5), (loss, ref)

    # Exercise padding + multi-tile reduction + 2-way parallel split on tiny data
    # by shrinking the tile cap (default cap stays 4096 for production sizes).
    k_u, k_p, k_t = jax.random.split(jax.random.PRNGKey(1), 3)
    batch = 30000
    total_uncertainty = jax.random.uniform(k_u, (batch,), dtype=jnp.float32)
    predictions = jax.random.randint(k_p, (batch,), 0, 10, dtype=jnp.int32)
    targets = jax.random.randint(k_t, (batch,), 0, 10, dtype=jnp.int32)

    loss = jax.block_until_ready(
        uncertainty_loss(total_uncertainty, predictions, targets, max_block_rows=32))
    ref = _reference(total_uncertainty, predictions, targets)
    assert jnp.allclose(loss, ref, atol=1e-5), (loss, ref)

    print("KERNEL_OK")
</pallas_src>

<mosaic_0001>
module attributes {stable_mosaic.version = 11 : i64} {
  func.func @_uncertainty_loss_kernel(%arg0: i32, %arg1: i32, %arg2: memref<32x128xf32, #tpu.memory_space<vmem>>, %arg3: memref<32x128xi8, #tpu.memory_space<vmem>>, %arg4: memref<1x8x128xf32, #tpu.memory_space<vmem>>) attributes {dimension_semantics = [#tpu.dimension_semantics<parallel>, #tpu.dimension_semantics<arbitrary>], iteration_bounds = array<i64: 1, 1>, scalar_prefetch = 0 : i64, scratch_operands = 0 : i64, tpu.core_type = #tpu.core_type<tc>, window_params = [{transform_indices = @transform_0, window_bounds = array<i64: 32, 128>}, {transform_indices = @transform_1, window_bounds = array<i64: 32, 128>}, {transform_indices = @transform_2, window_bounds = array<i64: 1, 8, 128>}]} {
    %c0 = arith.constant 0 : index
    %c0_0 = arith.constant 0 : index
    %0 = vector.load %arg2[%c0, %c0_0] : memref<32x128xf32, #tpu.memory_space<vmem>>, vector<32x128xf32>
    %c0_1 = arith.constant 0 : index
    %c0_2 = arith.constant 0 : index
    %1 = vector.load %arg3[%c0_1, %c0_2] : memref<32x128xi8, #tpu.memory_space<vmem>>, vector<32x128xi8>
    %c0_i8 = arith.constant 0 : i8
    %2 = vector.broadcast %c0_i8 : i8 to vector<32x128xi8>
    %3 = arith.cmpi ne, %1, %2 : vector<32x128xi8>
    %cst = arith.constant 1.000000e+00 : f32
    %4 = vector.broadcast %cst : f32 to vector<32x128xf32>
    %5 = arith.subf %4, %0 : vector<32x128xf32>
    %6 = arith.select %3, %5, %0 : vector<32x128xi1>, vector<32x128xf32>
    %7 = vector.shape_cast %6 : vector<32x128xf32> to vector<4x8x128xf32>
    %cst_3 = arith.constant dense<0.000000e+00> : vector<8x128xf32>
    %8 = vector.multi_reduction <add>, %7, %cst_3 [0] : vector<4x8x128xf32> to vector<8x128xf32>
    %c0_i32 = arith.constant 0 : i32
    %9 = arith.cmpi eq, %arg1, %c0_i32 : i32
    %10 = arith.extui %9 : i1 to i32
    %c0_i32_4 = arith.constant 0 : i32
    %11 = arith.cmpi ne, %10, %c0_i32_4 : i32
    scf.if %11 {
      %cst_11 = arith.constant 0.000000e+00 : f32
      %16 = vector.broadcast %cst_11 : f32 to vector<1x8x128xf32>
      %c0_12 = arith.constant 0 : index
      %c0_13 = arith.constant 0 : index
      %c0_14 = arith.constant 0 : index
      %17 = vector.load %arg4[%c0_12, %c0_13, %c0_14] : memref<1x8x128xf32, #tpu.memory_space<vmem>>, vector<1x8x128xf32>
      tpu.vector_store %arg4[%c0_12, %c0_13, %c0_14], %16 {strides = array<i32>} : memref<1x8x128xf32, #tpu.memory_space<vmem>>, vector<1x8x128xf32>,
    } else {
    }
    %c0_5 = arith.constant 0 : index
    %c0_6 = arith.constant 0 : index
    %c0_7 = arith.constant 0 : index
    %12 = vector.load %arg4[%c0_5, %c0_6, %c0_7] : memref<1x8x128xf32, #tpu.memory_space<vmem>>, vector<1x8x128xf32>
    %13 = vector.shape_cast %8 : vector<8x128xf32> to vector<1x8x128xf32>
    %14 = arith.addf %12, %13 : vector<1x8x128xf32>
    %c0_8 = arith.constant 0 : index
    %c0_9 = arith.constant 0 : index
    %c0_10 = arith.constant 0 : index
    %15 = vector.load %arg4[%c0_8, %c0_9, %c0_10] : memref<1x8x128xf32, #tpu.memory_space<vmem>>, vector<1x8x128xf32>
    tpu.vector_store %arg4[%c0_8, %c0_9, %c0_10], %14 {strides = array<i32>} : memref<1x8x128xf32, #tpu.memory_space<vmem>>, vector<1x8x128xf32>,
    return
  }
  func.func @transform_0(%arg0: i32, %arg1: i32) -> (i32, i32) {
    %c1_i32 = arith.constant 1 : i32
    %0 = arith.muli %arg0, %c1_i32 : i32
    %1 = arith.addi %0, %arg1 : i32
    %c0_i32 = arith.constant 0 : i32
    %c0_i32_0 = arith.constant 0 : i32
    return %1, %c0_i32 : i32, i32
  }
  func.func @transform_1(%arg0: i32, %arg1: i32) -> (i32, i32) {
    %c1_i32 = arith.constant 1 : i32
    %0 = arith.muli %arg0, %c1_i32 : i32
    %1 = arith.addi %0, %arg1 : i32
    %c0_i32 = arith.constant 0 : i32
    %c0_i32_0 = arith.constant 0 : i32
    return %1, %c0_i32 : i32, i32
  }
  func.func @transform_2(%arg0: i32, %arg1: i32) -> (i32, i32, i32) {
    %c0_i32 = arith.constant 0 : i32
    %c0_i32_0 = arith.constant 0 : i32
    %c0_i32_1 = arith.constant 0 : i32
    return %arg0, %c0_i32, %c0_i32_0 : i32, i32, i32
  }
}

</mosaic_0001>

<bundles_post_ra>
// kernel: tpu_custom_call.1
= control target key start
LH: loop header
LB: loop body
LE: loop exit
PB: predicated region body
PF: predicated region fallthrough
CT: control target
= control target key end

     0   :  { %7 = vsyncpa [#allocation3], 0  ;;  %s256_s0 = inlined_call_operand.hbm [shape: f32[32,128], index: 0, kind: input, shape index: {}]   ;;  %s257_s1 = inlined_call_operand.hbm [shape: s8[32,128], index: 1, kind: input, shape index: {}]   ;;  %s258_s2 = inlined_call_operand.hbm [shape: f32[1,8,128], index: 2, kind: output, shape index: {}]  }
   0x1   :  { %8 = vsyncpa [#allocation6], 0 }
   0x2   :  { %9 = vsyncpa [#allocation4], 0  ;;  %s199_s9 = smov [#allocation2]   ;;  %s127_s13 = scalar_lea.hbm %s256_s0, 512 }
   0x3   :  { %s19_s10 = sshll.u32 %s199_s9, 4  ;;  %p128_p0 = scmp.ne.s32.totalorder %s256_s0, %s127_s13  ;;  %s20_s10 = int_to_ptr.vmem [resolvable:$true] %s19_s10 }
   0x4   :  { %p131_p1 = scmp.lt.u32.totalorder %s127_s13, %s256_s0 }
   0x6   :  { %p133_p2 = pnand %p131_p1, %p128_p0 }
   0x8   :  { %136 = shalt.err (!%p133_p2)
}
   0x9   :  { %s137_s18 = scalar_lea.vmem %s20_s10, 512  ;;  %p142_p4 = scmp.lt.s32.totalorder %s20_s10, %s20_s10 }
   0xa   :  { %p138_p3 = scmp.ne.s32.totalorder %s20_s10, %s137_s18  ;;  %p143_p5 = scmp.lt.s32.totalorder %s137_s18, %s137_s18 }
   0xc   :  { %p144_p6 = por %p143_p5, %p142_p4 }
   0xe   :  { %p145_p7 = pnand %p144_p6, %p138_p3 }
  0x10   :  { %148 = shalt.err (!%p145_p7)
}
  0x11   :  { %s200_s19 = smov 128   ;;  %s201_s20 = smov 8  }
  0x12   :  { %25 = dma.hbm_to_vmem [thread:$0]  %s256_s0, 512, %s20_s10, [#allocation3], %s200_s19, %s200_s19, %s201_s20  }
  0x13   :  { %s202_s23 = smov [#allocation5]   ;;  %s149_s27 = scalar_lea.hbm %s257_s1, 128 }
  0x14   :  { %s35_s24 = sshll.u32 %s202_s23, 4  ;;  %p150_p8 = scmp.ne.s32.totalorder %s257_s1, %s149_s27  ;;  %s36_s24 = int_to_ptr.vmem [resolvable:$true] %s35_s24 }
  0x15   :  { %p153_p9 = scmp.lt.u32.totalorder %s149_s27, %s257_s1 }
  0x17   :  { %p155_p10 = pnand %p153_p9, %p150_p8 }
  0x19   :  { %158 = shalt.err (!%p155_p10)
}
  0x1a   :  { %s159_s4 = scalar_lea.vmem %s36_s24, 128  ;;  %p164_p12 = scmp.lt.s32.totalorder %s36_s24, %s36_s24 }
  0x1b   :  { %p160_p11 = scmp.ne.s32.totalorder %s36_s24, %s159_s4  ;;  %p165_p13 = scmp.lt.s32.totalorder %s159_s4, %s159_s4 }
  0x1d   :  { %p166_p0 = por %p165_p13, %p164_p12 }
  0x1f   :  { %p167_p1 = pnand %p166_p0, %p160_p11 }
  0x21   :  { %170 = shalt.err (!%p167_p1)
}
  0x22   :  { %38 = dma.hbm_to_vmem [thread:$0]  %s257_s1, 128, %s36_s24, [#allocation6]  }
  0x23   :  { %193 = dma.done.wait [#allocation3], 512  }
  0x24   :  { %194 = vsyncadd [#allocation3], 4294966784 }
  0x25   :  { %195 = dma.done.wait [#allocation6], 128  }
  0x26   :  { %196 = vsyncadd [#allocation6], 4294967168  ;;  %v54_v0 = vld [vmem:[#allocation5] sm:$0xff]  ;;  %v203_v1 = vmov 0   ;;  %v51_v8 = vld [vmem:[#allocation2 + $0x8] sm:$0xff]  ;;  %s204_s1 = smov [#allocation7]  }
  0x27   :  { %vm55_vm0 = vnez %v54_v0  ;;  %v50_v7 = vld [vmem:[#allocation2] sm:$0xff]  ;;  %v52_v9 = vld [vmem:[#allocation2 + $0x10] sm:$0xff]  ;;  %v57_v19 = vsub.f32 1.0, %v51_v8  ;;  %v53_v21 = vld [vmem:[#allocation2 + $0x18] sm:$0xff]  ;;  %s110_s6 = sshll.u32 %s204_s1, 4  ;;  %s111_s6 = int_to_ptr.vmem [resolvable:$true] %s110_s6 }
  0x28   :  { %v60_v2 = vsel %vm55_vm0, 16843009, %v203_v1  ;;  %v56_v18 = vsub.f32 1.0, %v50_v7  ;;  %v58_v20 = vsub.f32 1.0, %v52_v9  ;;  %v59_v29 = vsub.f32 1.0, %v53_v21  ;;  %s171_s7 = scalar_lea.vmem %s111_s6, 128  ;;  %p176_p3 = scmp.lt.s32.totalorder %s111_s6, %s111_s6 }
  0x29   :  { %v61_v3 = vunpack.c.0.s8 %v60_v2  ;;  %v62_v4 = vunpack.c.1.s8 %v60_v2  ;;  %v63_v5 = vunpack.c.2.s8 %v60_v2  ;;  %v64_v6 = vunpack.c.3.s8 %v60_v2  ;;  %p172_p2 = scmp.ne.s32.totalorder %s111_s6, %s171_s7  ;;  %p177_p4 = scmp.lt.s32.totalorder %s171_s7, %s171_s7 }
  0x2b   :  { %v65_v10 = vpack.c.b16 %v61_v3, %v61_v3  ;;  %v67_v11 = vpack.c.b16 %v62_v4, %v62_v4  ;;  %v69_v12 = vpack.c.b16 %v63_v5, %v63_v5  ;;  %v71_v13 = vpack.c.b16 %v64_v6, %v64_v6  ;;  %p178_p5 = por %p177_p4, %p176_p3 }
  0x2d   :  { %v66_v14 = vpack.c.b8 %v65_v10, %v65_v10  ;;  %v68_v15 = vpack.c.b8 %v67_v11, %v67_v11  ;;  %v70_v16 = vpack.c.b8 %v69_v12, %v69_v12  ;;  %v72_v17 = vpack.c.b8 %v71_v13, %v71_v13  ;;  %p179_p6 = pnand %p178_p5, %p172_p2 }
  0x2f   :  { %vm73_vm1 = vnez %v66_v14  ;;  %vm74_vm2 = vnez %v68_v15  ;;  %vm75_vm3 = vnez %v70_v16  ;;  %vm76_vm4 = vnez %v72_v17 }
  0x30   :  { %v77_v22 = vsel %vm73_vm1, 16843009, %v203_v1  ;;  %v78_v23 = vsel %vm74_vm2, 16843009, %v203_v1  ;;  %v79_v24 = vsel %vm75_vm3, 16843009, %v203_v1 }
  0x31   :  { %v80_v25 = vsel %vm76_vm4, 16843009, %v203_v1  ;;  %v81_v26 = vunpack.c.0.s8 %v77_v22  ;;  %v82_v27 = vunpack.c.0.s8 %v78_v23  ;;  %v83_v28 = vunpack.c.0.s8 %v79_v24 }
  0x32   :  { %v84_v30 = vunpack.c.0.s8 %v80_v25 }
  0x33   :  { %vm85_vm5 = vcmp.ne.s32.totalorder %v81_v26, 0  ;;  %vm86_vm6 = vcmp.ne.s32.totalorder %v82_v27, 0  ;;  %vm87_vm7 = vcmp.ne.s32.totalorder %v83_v28, 0 }
  0x34   :  { %vm88_vm8 = vcmp.ne.s32.totalorder %v84_v30, 0  ;;  %v89_v31 = vsel %vm85_vm5, %v56_v18, %v50_v7  ;;  %v90_v32 = vsel %vm86_vm6, %v57_v19, %v51_v8  ;;  %v91_v33 = vsel %vm87_vm7, %v58_v20, %v52_v9 }
  0x35   :  { %v93_v34 = vadd.f32 %v90_v32, %v89_v31  ;;  %v92_v35 = vsel %vm88_vm8, %v59_v29, %v53_v21 }
  0x37   :  { %v94_v36 = vadd.f32 %v93_v34, %v91_v33 }
  0x39   :  { %v95_v37 = vadd.f32 %v94_v36, %v92_v35 }
  0x3b   :  { %103 = vst [vmem:[#allocation7] sm:$0xff] %v95_v37 }
  0x3c   :  { %182 = shalt.err (!%p179_p6)
}
  0x3d   :  { %s183_s10 = scalar_lea.hbm %s258_s2, 128 }
  0x3e   :  { %p184_p7 = scmp.ne.s32.totalorder %s258_s2, %s183_s10  ;;  %p187_p8 = scmp.lt.u32.totalorder %s183_s10, %s258_s2 }
  0x40   :  { %p189_p9 = pnand %p187_p8, %p184_p7 }
  0x42   :  { %192 = shalt.err (!%p189_p9)
}
  0x43   :  { %113 = dma.vmem_to_hbm [thread:$0]  %s111_s6, 128, %s258_s2, [#allocation4]  }
  0x44   :  { %197 = dma.done.wait [#allocation4], 128  }
  0x45   :  { %198 = vsyncadd [#allocation4], 4294967168 }
  0x46   :  { %117 = vsyncpa [#allocation3], 1 }
  0x47   :  { %118 = vsyncpa [#allocation6], 1 }
  0x48   :  { %119 = vsyncpa [#allocation4], 1 }

</bundles_post_ra>
